<compile_context>
chip_gen: v7x
topology: tpu7x:2x2x1
jax: 0.10.0
libtpu: 0.0.40
codegen_flags: <defaults>
</compile_context>

<pallas_src>
import jax
import jax.numpy as jnp
from jax import lax
from jax.experimental import pallas as pl
from jax.experimental.pallas import tpu as pltpu


def syntax_head_kernel(x_ref, wh_ref, bh_ref, wt_ref, bt_ref, k_ref, troot_ref,
                       o_ref, tail_scr):
    """One grid step == TB batch elements.

    x_ref     : (TB, S, D)   raw input rows (no root row attached)
    wh_ref    : (D, H)       head projection weight (pre-transposed), MXU dtype
    bh_ref    : (1, H)       head bias (f32)
    wt_ref    : (D, H)       tail projection weight (pre-transposed), MXU dtype
    bt_ref    : (1, H)       tail bias (f32)
    k_ref     : (H, H)       bilinear kernel, MXU dtype
    troot_ref : (1, H)       relu(root @ Wt + bt) — batch-invariant tail row 0 (f32)
    o_ref     : (TB, S, S1)  biaffine scores, root *query* row already stripped
    tail_scr  : (TB, S1, H)  VMEM scratch: tail rows with the root folded in as row 0
    """
    TB, S, D = x_ref.shape
    H = k_ref.shape[0]
    mxu = wh_ref.dtype            # bf16 by default (f32 accumulation), or f32

    # ---- head / tail projections: (TB*S, D) @ (D, H); bias + ReLU in f32 ----
    x = x_ref[...].reshape(TB * S, D).astype(mxu)
    head = jnp.maximum(
        jnp.dot(x, wh_ref[...], preferred_element_type=jnp.float32)
        + bh_ref[...], 0.0)                                    # (TB*S, H) f32
    tail = jnp.maximum(
        jnp.dot(x, wt_ref[...], preferred_element_type=jnp.float32)
        + bt_ref[...], 0.0)                                    # (TB*S, H) f32

    # ---- head @ kernel ----
    hk = jnp.dot(head.astype(mxu), k_ref[...],
                 preferred_element_type=jnp.float32)           # (TB*S, H) f32

    # ---- fold the batch-invariant root tail row in as biaffine RHS row 0 ----
    tail_scr[:, 0:1, :] = jnp.broadcast_to(
        troot_ref[...].reshape(1, 1, H), (TB, 1, H))
    tail_scr[:, 1:, :] = tail.reshape(TB, S, H)

    # ---- biaffine: contract H, emit the full (TB, S, S1) block in one shot ----
    # (flash-attention style batched contraction over the last dim of both
    #  operands; no materialized transpose, single full-block output store).
    scores = lax.dot_general(
        hk.reshape(TB, S, H).astype(mxu),
        tail_scr[...].astype(mxu),
        dimension_numbers=(((2,), (2,)), ((0,), (0,))),
        preferred_element_type=jnp.float32)                    # (TB, S, S1)
    o_ref[...] = scores


def _chip_profile():
    """Best-effort (TensorCores per chip, per-grid-step VMEM budget in bytes).

    Detection is perf-only: a wrong guess just changes tiling, never results.
    """
    kind = ""
    try:
        kind = jax.devices()[0].device_kind.lower()
    except Exception:
        pass
    if "7" in kind:                        # v7x: 2 TCs/chip, 64 MiB VMEM per TC
        return 2, 24 << 20
    if "v4" in kind or "v5p" in kind:      # megacore: 2 TCs, 128 MiB VMEM
        return 2, 80 << 20
    return 1, 80 << 20                     # v5e / v6e: 1 TC, 128 MiB VMEM


def _vmem_bytes_per_step(tb, s, d, h, s1, mxu_bytes):
    """Conservative per-grid-step VMEM estimate (double-buffered I/O + consts
    + f32 intermediates + the (TB, S1, H) scratch tile)."""
    io = 2 * (tb * s * d * 4 + tb * s * s1 * 4)
    weights = 2 * ((2 * d * h + h * h) * mxu_bytes + 3 * h * 4)
    inter = (tb * s * (d * mxu_bytes + 3 * h * 4 + h * mxu_bytes + s1 * 4)
             + tb * s1 * (h * 4 + h * mxu_bytes))
    return io + weights + inter


def syntax_head_forward(inp, root, wh, bh, wt, bt, kernel, *,
                        batch_tile=None, compute_dtype=jnp.bfloat16):
    """inp: (B, S, D) float32.  Linear weights pre-transposed to (in, out).

    Returns (B, S, S+1) float32.  `compute_dtype` feeds the MXU operands
    (accumulation, bias, ReLU stay f32); bf16 is the right default on all
    current TPU generations (v5e/v6e/v7x MXUs are bf16-native).  Pass
    jnp.float32 for exact-eval scoring.
    """
    B, S, D = inp.shape
    H = wh.shape[1]
    S1 = S + 1
    mxu_bytes = jnp.dtype(compute_dtype).itemsize

    # Tiny parameter-only prep (in a real model this would be folded once):
    wh_c = wh.astype(compute_dtype)
    wt_c = wt.astype(compute_dtype)
    k_c = kernel.astype(compute_dtype)
    bh_r = bh.reshape(1, H).astype(jnp.float32)
    bt_r = bt.reshape(1, H).astype(jnp.float32)
    troot = jnp.maximum(root @ wt + bt, 0.0).reshape(1, H).astype(jnp.float32)

    # ---- generation-aware batch tile ----
    num_tc, vmem_budget = _chip_profile()
    if batch_tile is None:
        tb = max(1, pl.cdiv(B, num_tc))    # one big step per TensorCore
    else:
        tb = max(1, min(batch_tile, B))
    while tb > 1 and _vmem_bytes_per_step(tb, S, D, H, S1, mxu_bytes) > vmem_budget:
        tb -= 1

    grid = pl.cdiv(B, tb)
    b_pad = grid * tb
    x = inp if b_pad == B else jnp.pad(inp, ((0, b_pad - B), (0, 0), (0, 0)))

    est = _vmem_bytes_per_step(tb, S, D, H, S1, mxu_bytes)
    cp_kwargs = dict(dimension_semantics=("parallel",))
    if est > (30 << 20):                   # raise scoped VMEM only when needed
        cp_kwargs["vmem_limit_bytes"] = min(int(est * 1.25), 100 << 20)

    out = pl.pallas_call(
        syntax_head_kernel,
        out_shape=jax.ShapeDtypeStruct((b_pad, S, S1), jnp.float32),
        grid_spec=pltpu.PrefetchScalarGridSpec(
            num_scalar_prefetch=0,
            grid=(grid,),
            in_specs=[
                pl.BlockSpec((tb, S, D), lambda i: (i, 0, 0)),
                pl.BlockSpec((D, H), lambda i: (0, 0)),
                pl.BlockSpec((1, H), lambda i: (0, 0)),
                pl.BlockSpec((D, H), lambda i: (0, 0)),
                pl.BlockSpec((1, H), lambda i: (0, 0)),
                pl.BlockSpec((H, H), lambda i: (0, 0)),
                pl.BlockSpec((1, H), lambda i: (0, 0)),
            ],
            out_specs=pl.BlockSpec((tb, S, S1), lambda i: (i, 0, 0)),
            scratch_shapes=[pltpu.VMEM((tb, S1, H), jnp.float32)],
        ),
        compiler_params=pltpu.CompilerParams(**cp_kwargs),
    )(x, wh_c, bh_r, wt_c, bt_r, k_c, troot)

    return out if b_pad == B else out[:B]


def _reference(inp, root, wh, bh, wt, bt, kernel):
    """Straightforward JAX transcription of SyntaxHead.forward (eval mode)."""
    B, S, D = inp.shape
    x = jnp.concatenate(
        [jnp.broadcast_to(root[None, None, :], (B, 1, D)), inp], axis=1)
    head = jnp.maximum(x @ wh + bh, 0.0)
    tail = jnp.maximum(x @ wt + bt, 0.0)
    out = (head @ kernel) @ jnp.swapaxes(tail, -2, -1)
    return out[:, 1:, :]


if __name__ == "__main__":
    # Small shapes consistent with the module.
    B, S, D, H = 2, 8, 32, 32

    key = jax.random.PRNGKey(0)
    k_inp, k_root, k_wh, k_bh, k_wt, k_bt = jax.random.split(key, 6)

    inp = jax.random.normal(k_inp, (B, S, D), dtype=jnp.float32)

    # Parameters (synthetic init mirroring __init__/reset_parameters shapes):
    # root ~ U[0,1), kernel = eye(H), Linear weights pre-transposed to (in, out).
    root = jax.random.uniform(k_root, (D,), dtype=jnp.float32)
    kernel = jnp.eye(H, dtype=jnp.float32)
    wh = jax.random.uniform(k_wh, (D, H), jnp.float32, -0.1, 0.1)   # = Wh^T
    bh = jax.random.uniform(k_bh, (H,), jnp.float32, -0.1, 0.1)
    wt = jax.random.uniform(k_wt, (D, H), jnp.float32, -0.1, 0.1)   # = Wt^T
    bt = jax.random.uniform(k_bt, (H,), jnp.float32, -0.1, 0.1)

    ref = _reference(inp, root, wh, bh, wt, bt, kernel)

    # f32 MXU-operand path (exact-eval mode).  Tolerance covers TPU default
    # (reduced-precision) f32 matmul rounding differences vs. the XLA reference.
    out_f32 = syntax_head_forward(inp, root, wh, bh, wt, bt, kernel,
                                  compute_dtype=jnp.float32)
    out_f32 = jax.block_until_ready(out_f32)
    assert out_f32.shape == (B, S, S + 1), out_f32.shape
    assert jnp.allclose(out_f32, ref, atol=1e-2, rtol=1e-2), "f32 path mismatch"

    # Default bf16 MXU-operand path (f32 accumulation) — recommended on
    # v5e / v6e / v7x.  Errors compound across the three matmuls; fine for
    # eval scoring / argmax parsing, hence the looser tolerance.
    out_bf16 = syntax_head_forward(inp, root, wh, bh, wt, bt, kernel)
    out_bf16 = jax.block_until_ready(out_bf16)
    assert out_bf16.shape == (B, S, S + 1), out_bf16.shape
    assert jnp.allclose(out_bf16, ref, atol=1e-1, rtol=1e-1), "bf16 path mismatch"

    print("KERNEL_OK")
</pallas_src>

<mosaic_0001>
module attributes {stable_mosaic.version = 11 : i64} {
  func.func @syntax_head_kernel(%arg0: i32, %arg1: memref<2x8x32xf32, #tpu.memory_space<vmem>>, %arg2: memref<32x32xf32, #tpu.memory_space<vmem>>, %arg3: memref<1x32xf32, #tpu.memory_space<vmem>>, %arg4: memref<32x32xf32, #tpu.memory_space<vmem>>, %arg5: memref<1x32xf32, #tpu.memory_space<vmem>>, %arg6: memref<32x32xf32, #tpu.memory_space<vmem>>, %arg7: memref<1x32xf32, #tpu.memory_space<vmem>>, %arg8: memref<2x8x9xf32, #tpu.memory_space<vmem>>, %arg9: memref<2x9x32xf32, #tpu.memory_space<vmem>>) attributes {dimension_semantics = [#tpu.dimension_semantics<parallel>], iteration_bounds = array<i64: 1>, scalar_prefetch = 0 : i64, scratch_operands = 1 : i64, tpu.core_type = #tpu.core_type<tc>, window_params = [{transform_indices = @transform_0, window_bounds = array<i64: 2, 8, 32>}, {pipeline_mode = #tpu.pipeline_mode<synchronous>, transform_indices = @transform_1, window_bounds = array<i64: 32, 32>}, {pipeline_mode = #tpu.pipeline_mode<synchronous>, transform_indices = @transform_2, window_bounds = array<i64: 1, 32>}, {pipeline_mode = #tpu.pipeline_mode<synchronous>, transform_indices = @transform_3, window_bounds = array<i64: 32, 32>}, {pipeline_mode = #tpu.pipeline_mode<synchronous>, transform_indices = @transform_4, window_bounds = array<i64: 1, 32>}, {pipeline_mode = #tpu.pipeline_mode<synchronous>, transform_indices = @transform_5, window_bounds = array<i64: 32, 32>}, {pipeline_mode = #tpu.pipeline_mode<synchronous>, transform_indices = @transform_6, window_bounds = array<i64: 1, 32>}, {transform_indices = @transform_7, window_bounds = array<i64: 2, 8, 9>}]} {
    %c0 = arith.constant 0 : index
    %c0_0 = arith.constant 0 : index
    %c0_1 = arith.constant 0 : index
    %0 = vector.load %arg1[%c0, %c0_0, %c0_1] : memref<2x8x32xf32, #tpu.memory_space<vmem>>, vector<2x8x32xf32>
    %1 = vector.shape_cast %0 : vector<2x8x32xf32> to vector<16x32xf32>
    %c0_2 = arith.constant 0 : index
    %c0_3 = arith.constant 0 : index
    %2 = vector.load %arg2[%c0_2, %c0_3] : memref<32x32xf32, #tpu.memory_space<vmem>>, vector<32x32xf32>
    %cst = arith.constant dense<0.000000e+00> : vector<16x32xf32>
    %3 = tpu.matmul %1, %2, %cst {dimension_numbers = #tpu.dot_dimension_numbers<[1], [0], [0], [1], [0, 0, 1, 1], [], []>} : vector<16x32xf32>, vector<32x32xf32>, vector<16x32xf32> -> vector<16x32xf32>
    %c0_4 = arith.constant 0 : index
    %c0_5 = arith.constant 0 : index
    %4 = vector.load %arg3[%c0_4, %c0_5] : memref<1x32xf32, #tpu.memory_space<vmem>>, vector<1x32xf32>
    %5 = vector.broadcast %4 : vector<1x32xf32> to vector<16x32xf32>
    %6 = arith.addf %3, %5 : vector<16x32xf32>
    %cst_6 = arith.constant 0.000000e+00 : f32
    %7 = vector.broadcast %cst_6 : f32 to vector<16x32xf32>
    %8 = arith.maximumf %6, %7 : vector<16x32xf32>
    %c0_7 = arith.constant 0 : index
    %c0_8 = arith.constant 0 : index
    %9 = vector.load %arg4[%c0_7, %c0_8] : memref<32x32xf32, #tpu.memory_space<vmem>>, vector<32x32xf32>
    %cst_9 = arith.constant dense<0.000000e+00> : vector<16x32xf32>
    %10 = tpu.matmul %1, %9, %cst_9 {dimension_numbers = #tpu.dot_dimension_numbers<[1], [0], [0], [1], [0, 0, 1, 1], [], []>} : vector<16x32xf32>, vector<32x32xf32>, vector<16x32xf32> -> vector<16x32xf32>
    %c0_10 = arith.constant 0 : index
    %c0_11 = arith.constant 0 : index
    %11 = vector.load %arg5[%c0_10, %c0_11] : memref<1x32xf32, #tpu.memory_space<vmem>>, vector<1x32xf32>
    %12 = vector.broadcast %11 : vector<1x32xf32> to vector<16x32xf32>
    %13 = arith.addf %10, %12 : vector<16x32xf32>
    %cst_12 = arith.constant 0.000000e+00 : f32
    %14 = vector.broadcast %cst_12 : f32 to vector<16x32xf32>
    %15 = arith.maximumf %13, %14 : vector<16x32xf32>
    %c0_13 = arith.constant 0 : index
    %c0_14 = arith.constant 0 : index
    %16 = vector.load %arg6[%c0_13, %c0_14] : memref<32x32xf32, #tpu.memory_space<vmem>>, vector<32x32xf32>
    %cst_15 = arith.constant dense<0.000000e+00> : vector<16x32xf32>
    %17 = tpu.matmul %8, %16, %cst_15 {dimension_numbers = #tpu.dot_dimension_numbers<[1], [0], [0], [1], [0, 0, 1, 1], [], []>} : vector<16x32xf32>, vector<32x32xf32>, vector<16x32xf32> -> vector<16x32xf32>
    %c0_16 = arith.constant 0 : index
    %c0_17 = arith.constant 0 : index
    %18 = vector.load %arg7[%c0_16, %c0_17] : memref<1x32xf32, #tpu.memory_space<vmem>>, vector<1x32xf32>
    %19 = vector.shape_cast %18 : vector<1x32xf32> to vector<1x1x32xf32>
    %20 = vector.shape_cast %19 : vector<1x1x32xf32> to vector<1x1x32xf32>
    %21 = vector.broadcast %20 : vector<1x1x32xf32> to vector<2x1x32xf32>
    %c0_18 = arith.constant 0 : index
    %c0_19 = arith.constant 0 : index
    %c0_20 = arith.constant 0 : index
    %22 = vector.load %arg9[%c0_18, %c0_19, %c0_20] : memref<2x9x32xf32, #tpu.memory_space<vmem>>, vector<2x1x32xf32>
    tpu.vector_store %arg9[%c0_18, %c0_19, %c0_20], %21 {strides = array<i32>} : memref<2x9x32xf32, #tpu.memory_space<vmem>>, vector<2x1x32xf32>,
    %23 = vector.shape_cast %15 : vector<16x32xf32> to vector<2x8x32xf32>
    %c0_21 = arith.constant 0 : index
    %c1 = arith.constant 1 : index
    %c0_22 = arith.constant 0 : index
    %24 = vector.load %arg9[%c0_21, %c1, %c0_22] : memref<2x9x32xf32, #tpu.memory_space<vmem>>, vector<2x8x32xf32>
    tpu.vector_store %arg9[%c0_21, %c1, %c0_22], %23 {strides = array<i32>} : memref<2x9x32xf32, #tpu.memory_space<vmem>>, vector<2x8x32xf32>,
    %25 = vector.shape_cast %17 : vector<16x32xf32> to vector<2x8x32xf32>
    %c0_23 = arith.constant 0 : index
    %c0_24 = arith.constant 0 : index
    %c0_25 = arith.constant 0 : index
    %26 = vector.load %arg9[%c0_23, %c0_24, %c0_25] : memref<2x9x32xf32, #tpu.memory_space<vmem>>, vector<2x9x32xf32>
    %cst_26 = arith.constant dense<0.000000e+00> : vector<2x8x9xf32>
    %27 = tpu.matmul %25, %26, %cst_26 {dimension_numbers = #tpu.dot_dimension_numbers<[2], [2], [1], [1], [0, 0, 0, 1, 1, 1], [0], [0]>} : vector<2x8x32xf32>, vector<2x9x32xf32>, vector<2x8x9xf32> -> vector<2x8x9xf32>
    %c0_27 = arith.constant 0 : index
    %c0_28 = arith.constant 0 : index
    %c0_29 = arith.constant 0 : index
    %28 = vector.load %arg8[%c0_27, %c0_28, %c0_29] : memref<2x8x9xf32, #tpu.memory_space<vmem>>, vector<2x8x9xf32>
    tpu.vector_store %arg8[%c0_27, %c0_28, %c0_29], %27 {strides = array<i32>} : memref<2x8x9xf32, #tpu.memory_space<vmem>>, vector<2x8x9xf32>,
    return
  }
  func.func @transform_0(%arg0: i32) -> (i32, i32, i32) {
    %c0_i32 = arith.constant 0 : i32
    %c0_i32_0 = arith.constant 0 : i32
    %c0_i32_1 = arith.constant 0 : i32
    return %arg0, %c0_i32, %c0_i32_0 : i32, i32, i32
  }
  func.func @transform_1(%arg0: i32) -> (i32, i32) {
    %c0_i32 = arith.constant 0 : i32
    %c0_i32_0 = arith.constant 0 : i32
    %c0_i32_1 = arith.constant 0 : i32
    return %c0_i32, %c0_i32_0 : i32, i32
  }
  func.func @transform_2(%arg0: i32) -> (i32, i32) {
    %c0_i32 = arith.constant 0 : i32
    %c0_i32_0 = arith.constant 0 : i32
    %c0_i32_1 = arith.constant 0 : i32
    return %c0_i32, %c0_i32_0 : i32, i32
  }
  func.func @transform_3(%arg0: i32) -> (i32, i32) {
    %c0_i32 = arith.constant 0 : i32
    %c0_i32_0 = arith.constant 0 : i32
    %c0_i32_1 = arith.constant 0 : i32
    return %c0_i32, %c0_i32_0 : i32, i32
  }
  func.func @transform_4(%arg0: i32) -> (i32, i32) {
    %c0_i32 = arith.constant 0 : i32
    %c0_i32_0 = arith.constant 0 : i32
    %c0_i32_1 = arith.constant 0 : i32
    return %c0_i32, %c0_i32_0 : i32, i32
  }
  func.func @transform_5(%arg0: i32) -> (i32, i32) {
    %c0_i32 = arith.constant 0 : i32
    %c0_i32_0 = arith.constant 0 : i32
    %c0_i32_1 = arith.constant 0 : i32
    return %c0_i32, %c0_i32_0 : i32, i32
  }
  func.func @transform_6(%arg0: i32) -> (i32, i32) {
    %c0_i32 = arith.constant 0 : i32
    %c0_i32_0 = arith.constant 0 : i32
    %c0_i32_1 = arith.constant 0 : i32
    return %c0_i32, %c0_i32_0 : i32, i32
  }
  func.func @transform_7(%arg0: i32) -> (i32, i32, i32) {
    %c0_i32 = arith.constant 0 : i32
    %c0_i32_0 = arith.constant 0 : i32
    %c0_i32_1 = arith.constant 0 : i32
    return %arg0, %c0_i32, %c0_i32_0 : i32, i32, i32
  }
}

</mosaic_0001>

<bundles_post_ra>
// kernel: tpu_custom_call.1
= control target key start
LH: loop header
LB: loop body
LE: loop exit
PB: predicated region body
PF: predicated region fallthrough
CT: control target
= control target key end

     0   :  { %12 = vsyncpa [#allocation4], 0  ;;  %s947_s0 = inlined_call_operand.hbm [shape: f32[2,8,32], index: 0, kind: input, shape index: {}]   ;;  %s948_s1 = inlined_call_operand.hbm [shape: f32[32,32], index: 1, kind: input, shape index: {}]   ;;  %s949_s2 = inlined_call_operand.vmem [shape: f32[1,32], index: 2, kind: input, shape index: {}]   ;;  %s950_s3 = inlined_call_operand.hbm [shape: f32[32,32], index: 3, kind: input, shape index: {}]   ;;  %s951_s4 = inlined_call_operand.vmem [shape: f32[1,32], index: 4, kind: input, shape index: {}]   ;;  %s952_s5 = inlined_call_operand.hbm [shape: f32[32,32], index: 5, kind: input, shape index: {}]   ;;  %s953_s6 = inlined_call_operand.vmem [shape: f32[1,32], index: 6, kind: input, shape index: {}]   ;;  %s954_s7 = inlined_call_operand.hbm [shape: f32[2,8,9], index: 7, kind: output, shape index: {}]  }
   0x1   :  { %13 = vsyncpa [#allocation7], 0 }
   0x2   :  { %14 = vsyncpa [#allocation10], 0 }
   0x3   :  { %15 = vsyncpa [#allocation5], 0  ;;  %s787_s24 = smov [#allocation6]   ;;  %s788_s26 = smov [#allocation3]  }
   0x4   :  { %s33_s25 = sshll.u32 %s787_s24, 4  ;;  %s21_s27 = sshll.u32 %s788_s26, 4  ;;  %s34_s25 = int_to_ptr.vmem [resolvable:$true] %s33_s25  ;;  %s837_s27 = int_to_ptr.vmem [resolvable:$true] %s21_s27 }
   0x5   :  { %s669_s30 = scalar_lea.hbm %s948_s1, 512 }
   0x6   :  { %p670_p0 = scmp.ne.s32.totalorder %s948_s1, %s669_s30  ;;  %p673_p1 = scmp.lt.u32.totalorder %s669_s30, %s948_s1 }
   0x8   :  { %p675_p2 = pnand %p673_p1, %p670_p0 }
   0xa   :  { %678 = shalt.err (!%p675_p2)
}
   0xb   :  { %s679_s12 = scalar_lea.vmem %s34_s25, 512  ;;  %p684_p4 = scmp.lt.s32.totalorder %s34_s25, %s34_s25 }
   0xc   :  { %p680_p3 = scmp.ne.s32.totalorder %s34_s25, %s679_s12  ;;  %p685_p5 = scmp.lt.s32.totalorder %s679_s12, %s679_s12 }
   0xe   :  { %p686_p6 = por %p685_p5, %p684_p4 }
  0x10   :  { %p687_p7 = pnand %p686_p6, %p680_p3 }
  0x12   :  { %690 = shalt.err (!%p687_p7)
}
  0x13   :  { %s789_s13 = smov 128   ;;  %s790_s14 = smov 8  }
  0x14   :  { %39 = dma.hbm_to_vmem [thread:$0]  %s948_s1, 512, %s34_s25, [#allocation7], %s789_s13, %s789_s13, %s790_s14  }
  0x15   :  { %s691_s19 = scalar_lea.hbm %s947_s0, 256 }
  0x16   :  { %p692_p8 = scmp.ne.s32.totalorder %s947_s0, %s691_s19  ;;  %p695_p9 = scmp.lt.u32.totalorder %s691_s19, %s947_s0 }
  0x18   :  { %p697_p10 = pnand %p695_p9, %p692_p8 }
  0x1a   :  { %700 = shalt.err (!%p697_p10)
}
  0x1b   :  { %s701_s24 = scalar_lea.vmem %s837_s27, 256  ;;  %p706_p12 = scmp.lt.s32.totalorder %s837_s27, %s837_s27 }
  0x1c   :  { %p702_p11 = scmp.ne.s32.totalorder %s837_s27, %s701_s24  ;;  %p707_p13 = scmp.lt.s32.totalorder %s701_s24, %s701_s24 }
  0x1e   :  { %p708_p0 = por %p707_p13, %p706_p12 }
  0x20   :  { %p709_p1 = pnand %p708_p0, %p702_p11 }
  0x22   :  { %712 = shalt.err (!%p709_p1)
}
  0x23   :  { %27 = dma.hbm_to_vmem [thread:$0]  %s947_s0, 256, %s837_s27, [#allocation4], %s789_s13, %s789_s13, %s790_s14  }
  0x24   :  { %s791_s26 = smov [#allocation8]   ;;  %s792_s29 = smov [#allocation9]  }
  0x25   :  { %s47_s28 = sshll.u32 %s791_s26, 4  ;;  %s61_s30 = sshll.u32 %s792_s29, 4  ;;  %s48_s28 = int_to_ptr.vmem [resolvable:$true] %s47_s28  ;;  %s874_s30 = int_to_ptr.vmem [resolvable:$true] %s61_s30 }
  0x26   :  { %s713_s10 = scalar_lea.hbm %s950_s3, 512 }
  0x27   :  { %p714_p2 = scmp.ne.s32.totalorder %s950_s3, %s713_s10  ;;  %p717_p3 = scmp.lt.u32.totalorder %s713_s10, %s950_s3 }
  0x29   :  { %p719_p4 = pnand %p717_p3, %p714_p2 }
  0x2b   :  { %722 = shalt.err (!%p719_p4)
}
  0x2c   :  { %s723_s0 = scalar_lea.vmem %s48_s28, 512  ;;  %p728_p6 = scmp.lt.s32.totalorder %s48_s28, %s48_s28 }
  0x2d   :  { %p724_p5 = scmp.ne.s32.totalorder %s48_s28, %s723_s0  ;;  %p729_p7 = scmp.lt.s32.totalorder %s723_s0, %s723_s0 }
  0x2f   :  { %p730_p8 = por %p729_p7, %p728_p6 }
  0x31   :  { %p731_p9 = pnand %p730_p8, %p724_p5 }
  0x33   :  { %734 = shalt.err (!%p731_p9)
}
  0x34   :  { %53 = dma.hbm_to_vmem [thread:$0]  %s950_s3, 512, %s48_s28, [#allocation7], %s789_s13, %s789_s13, %s790_s14  }
  0x35   :  { %s735_s20 = scalar_lea.hbm %s952_s5, 512 }
  0x36   :  { %p736_p10 = scmp.ne.s32.totalorder %s952_s5, %s735_s20  ;;  %p739_p11 = scmp.lt.u32.totalorder %s735_s20, %s952_s5 }
  0x38   :  { %p741_p12 = pnand %p739_p11, %p736_p10 }
  0x3a   :  { %744 = shalt.err (!%p741_p12)
}
  0x3b   :  { %s745_s1 = scalar_lea.vmem %s874_s30, 512  ;;  %p750_p0 = scmp.lt.s32.totalorder %s874_s30, %s874_s30 }
  0x3c   :  { %p746_p13 = scmp.ne.s32.totalorder %s874_s30, %s745_s1  ;;  %p751_p1 = scmp.lt.s32.totalorder %s745_s1, %s745_s1 }
  0x3e   :  { %p752_p2 = por %p751_p1, %p750_p0 }
  0x40   :  { %p753_p3 = pnand %p752_p2, %p746_p13 }
  0x42   :  { %756 = shalt.err (!%p753_p3)
}
  0x43   :  { %67 = dma.hbm_to_vmem [thread:$0]  %s952_s5, 512, %s874_s30, [#allocation10], %s789_s13, %s789_s13, %s790_s14  }
  0x44   :  { %779 = dma.done.wait [#allocation4], 256  }
  0x45   :  { %780 = vsyncadd [#allocation4], 4294967040 }
  0x46   :  { %781 = dma.done.wait [#allocation7], 1024  }
  0x47   :  { %782 = vsyncadd [#allocation7], 4294966272 }
  0x48   :  { %783 = dma.done.wait [#allocation10], 512  }
  0x49   :  { %784 = vsyncadd [#allocation10], 4294966784  ;;  %vm95_vm0 = vcmask 261120   ;;  %v84_v0 = vld [vmem:[#allocation6] sm:$0xff]  ;;  %v85_v1 = vld [vmem:[#allocation6 + $0x8] sm:$0xff]  ;;  %vm353_vm1 = vcmask 253952  }
  0x4a   :  { %v86_v2 = vld [vmem:[#allocation6 + $0x10] sm:$0xff]  ;;  %v627_v3 = vpack.c.bf16 %v85_v1, %v84_v0  ;;  %v87_v4 = vld [vmem:[#allocation6 + $0x18] sm:$0xff]  ;;  %v179_v7 = vld [vmem:[#allocation8] sm:$0xff]  ;;  %v793_v21 = vmov 0.0|0.0   ;;  %vm794_vm3 = vmmov 0   ;;  %v795_v42 = vmov 0.0  }
  0x4b   :  { %v82_v5 = vld [vmem:[#allocation3] sm:$0xff]  ;;  %v631_v6 = vpack.c.bf16 %v87_v4, %v86_v2  ;;  %v180_v8 = vld [vmem:[#allocation8 + $0x8] sm:$0xff]  ;;  %v182_v11 = vld [vmem:[#allocation8 + $0x18] sm:$0xff]  ;;  %vm520_vm4 = vcmask 72704  }
  0x4c   :  { %588 = vmatprep.mubr.msk.f32.mxu0 %vm95_vm0, %v82_v5  ;;  %v181_v9 = vld [vmem:[#allocation8 + $0x10] sm:$0xff]  ;;  %599 = vmatprep.mubr.msk.f32.mxu1 %vm95_vm0, %v82_v5  ;;  %v635_v10 = vpack.c.bf16 %v180_v8, %v179_v7  ;;  %v267_v12 = vld [vmem:[#allocation9] sm:$0xff]  ;;  %v268_v13 = vld [vmem:[#allocation9 + $0x8] sm:$0xff] }
  0x4d   :  { %628 = vmatprep.subr.bf16.mxu0 %v627_v3  ;;  %v639_v14 = vpack.c.bf16 %v182_v11, %v181_v9  ;;  %v643_v15 = vpack.c.bf16 %v268_v13, %v267_v12  ;;  %v83_v16 = vld [vmem:[#allocation3 + $0x8] sm:$0xff]  ;;  %v269_v17 = vld [vmem:[#allocation9 + $0x10] sm:$0xff]  ;;  %vm653_vm2 = vmpackc.low %vm95_vm0, %vm95_vm0 }
  0x4e   :  { %630 = vmatpush3.bf16.msra.mxu0 %v627_v3  ;;  %636 = vmatprep.subr.bf16.mxu1 %v635_v10  ;;  %v270_v18 = vld [vmem:[#allocation9 + $0x18] sm:$0xff]  ;;  %v352_v20 = vld [vmem:[%s953_s6] sm:$0x1] }
  0x4f   :  { %632 = vmatprep.subr.bf16.mxu0 %v631_v6  ;;  %638 = vmatpush3.bf16.msra.mxu1 %v635_v10  ;;  %v647_v19 = vpack.c.bf16 %v270_v18, %v269_v17  ;;  %354 = vst.msk [vmem:[#allocation2] sm:$0x1] %vm353_vm1, %v352_v20  ;;  %355 = vst.msk [vmem:[#allocation2 + $0x10] sm:$0x1] %vm353_vm1, %v352_v20  ;;  %v542_v22 = vld [vmem:[%s949_s2] ss:$0 sm:$0xff] }
  0x50   :  { %640 = vmatprep.subr.bf16.mxu1 %v639_v14  ;;  %v545_v24 = vld [vmem:[%s951_s4] ss:$0 sm:$0xff]  ;;  %s796_s2 = smov [#allocation11]  }
  0x51   :  { %s528_s4 = sshll.u32 %s796_s2, 4  ;;  %s529_s4 = int_to_ptr.vmem [resolvable:$true] %s528_s4 }
  0x52   :  { %634 = vmatpush3.bf16.msra.mxu0 %v631_v6  ;;  %s757_s6 = scalar_lea.vmem %s529_s4, 256  ;;  %p762_p5 = scmp.lt.s32.totalorder %s529_s4, %s529_s4 }
  0x53   :  { %644 = vmatprep.subr.bf16.mxu0 %v643_v15  ;;  %642 = vmatpush3.bf16.msra.mxu1 %v639_v14  ;;  %p758_p4 = scmp.ne.s32.totalorder %s529_s4, %s757_s6  ;;  %p763_p6 = scmp.lt.s32.totalorder %s757_s6, %s757_s6 }
  0x54   :  { %651 = vmatprep.subr.bf16.mxu1 %v793_v21 }
  0x55   :  { %589 = vmatmul.mubr.msk.f32.vlgmr.msra.gmra.mrb[0].mxu0 %vm95_vm0, %v83_v16  ;;  %p764_p7 = por %p763_p6, %p762_p5 }
  0x56   :  { %646 = vmatpush3.bf16.msra.mxu0 %v643_v15  ;;  %600 = vmatmul.mubr.msk.f32.vlgmr.msra.gmra.mrb[0].mxu1 %vm95_vm0, %v83_v16 }
  0x57   :  { %648 = vmatprep.subr.bf16.mxu0 %v647_v19  ;;  %617 = vmatprep.mubr.msk.f32.mxu1 %vm794_vm3, %v795_v42  ;;  %p765_p8 = pnand %p764_p7, %p758_p4 }
  0x5a   :  { %650 = vmatpush3.bf16.msra.mxu0 %v647_v19 }
  0x5b   :  { %655 = vmatprep.subr.bf16.mxu0 %v793_v21 }
 0x128   :  { %v590_v23 = vpop.f32.mrb[0].mxu0 }
 0x129   :  { %v174_v25 = vadd.f32 %v590_v23, %v542_v22  ;;  %v168_v26 = vpop.f32.mrb[1].mxu0  ;;  %v601_v28 = vpop.f32.mrb[0].mxu1 }
 0x12a   :  { %v169_v27 = vadd.f32 %v542_v22, %v168_v26  ;;  %v262_v29 = vadd.f32 %v601_v28, %v545_v24  ;;  %v256_v30 = vpop.f32.mrb[1].mxu1 }
 0x12b   :  { %v257_v32 = vadd.f32 %v545_v24, %v256_v30  ;;  %v178_v33 = vmax.f32 %v174_v25, 0.0 }
 0x12c   :  { %v177_v31 = vmax.f32 %v169_v27, 0.0  ;;  %v266_v34 = vmax.f32 %v262_v29, 0.0 }
 0x12d   :  { %v265_v35 = vmax.f32 %v257_v32, 0.0 }
 0x12e   :  { %610 = vmatprep.mubr.msk.f32.mxu0 %vm95_vm0, %v177_v31  ;;  %357 = vst.msk [vmem:[#allocation2 + $0x11] sm:$0xff] %vm95_vm0, %v266_v34 }
 0x12f   :  { %611 = vmatmul.mubr.msk.f32.vlgmr.msra.gmra.mrb[2].mxu0 %vm95_vm0, %v178_v33  ;;  %356 = vst.msk [vmem:[#allocation2 + $0x1] sm:$0xff] %vm95_vm0, %v265_v35 }
 0x130   :  { %624 = vmatprep.mubr.msk.f32.mxu0 %vm794_vm3, %v795_v42 }
 0x135   :  { %v360_v36 = vld [vmem:[#allocation2 + $0x10] sm:$0xff]  ;;  %v361_v37 = vld [vmem:[#allocation2 + $0x18] sm:$0x1] }
 0x136   :  { %v358_v38 = vld [vmem:[#allocation2] sm:$0xff]  ;;  %v359_v39 = vld [vmem:[#allocation2 + $0x8] sm:$0x1]  ;;  %v656_v40 = vpack.c.bf16 %v361_v37, %v360_v36 }
 0x137   :  { %v652_v41 = vpack.c.bf16 %v359_v39, %v358_v38 }
 0x138   :  { %658 = vmatpush3.bf16.xpose.msk.msra.mxu0 %vm653_vm2, %v656_v40 }
 0x139   :  { %654 = vmatpush3.bf16.xpose.msk.msra.mxu1 %vm653_vm2, %v652_v41 }
 0x202   :  { %v612_v43 = vpop.f32.mrb[2].mxu0 }
 0x203   :  { %v343_v44 = vpop.f32.mrb[3].mxu0  ;;  %625 = vmatmul.mubr.msk.f32.vlgmr.msra.gmra.mrb[4].mxu0 %vm95_vm0, %v612_v43 }
 0x204   :  { %618 = vmatmul.mubr.msk.f32.vlgmr.msra.gmra.mrb[2].mxu1 %vm95_vm0, %v343_v44 }
 0x2d6   :  { %v516_v45 = vpop.f32.mrb[4].mxu0 }
 0x2d7   :  { %522 = vst.msk [vmem:[#allocation11 + $0x8] sm:$0xff] %vm520_vm4, %v516_v45  ;;  %v437_v46 = vpop.f32.mrb[2].mxu1  ;;  %v626_v47 = vpop.f32.mrb[5].mxu0 }
 0x2d8   :  { %521 = vst.msk [vmem:[#allocation11] sm:$0xff] %vm520_vm4, %v437_v46  ;;  %v619_v48 = vpop.f32.mrb[3].mxu1 }
 0x2d9   :  { %768 = shalt.err (!%p765_p8)
}
 0x2da   :  { %s769_s11 = scalar_lea.hbm %s954_s7, 256 }
 0x2db   :  { %p770_p9 = scmp.ne.s32.totalorder %s954_s7, %s769_s11  ;;  %p773_p10 = scmp.lt.u32.totalorder %s769_s11, %s954_s7 }
 0x2dd   :  { %p775_p11 = pnand %p773_p10, %p770_p9 }
 0x2df   :  { %778 = shalt.err (!%p775_p11)
}
 0x2e0   :  { %534 = dma.vmem_to_hbm [thread:$0]  %s529_s4, 256, %s954_s7, [#allocation5], %s789_s13, %s789_s13, %s790_s14  }
 0x2e1   :  { %785 = dma.done.wait [#allocation5], 256  }
 0x2e2   :  { %786 = vsyncadd [#allocation5], 4294967040 }
 0x2e3   :  { %538 = vsyncpa [#allocation4], 1 }
 0x2e4   :  { %539 = vsyncpa [#allocation7], 1 }
 0x2e5   :  { %540 = vsyncpa [#allocation10], 1 }
 0x2e6   :  { %541 = vsyncpa [#allocation5], 1 }

</bundles_post_ra>
